<compile_context>
chip_gen: v7x
topology: tpu7x:2x2x1
jax: 0.10.0
libtpu: 0.0.40
codegen_flags: <defaults>
</compile_context>

<pallas_src>
import functools

import jax
import jax.numpy as jnp
from jax import lax
from jax.experimental import pallas as pl
from jax.experimental.pallas import tpu as pltpu

LANE = 128     # vreg lane width (last dim)
SUBLANE = 8    # vreg sublanes (second-to-last dim, f32)


def _round_up(x, m):
    return ((x + m - 1) // m) * m


# ----------------------------- Pallas kernel --------------------------------

def _decoder_mlp_kernel(*refs, conditional, num_labels_pad, n_layers):
    """Fused MLP: x = Sigmoid(Linear_{L-1}(ReLU(... ReLU(Linear_0(z|c)) ...))).

    Ref order: z, [c], w0_z, [w0_c], b0, w1, b1, ..., out.
    All refs are whole (padded) arrays resident in VMEM.
    """
    refs = list(refs)
    z_ref = refs.pop(0)
    c_ref = refs.pop(0) if conditional else None
    o_ref = refs.pop()                      # output ref is last

    x = z_ref[...]                          # (B_pad, latent_pad) f32
    b_rows = x.shape[0]

    for li in range(n_layers):
        if li == 0:
            w_z = refs.pop(0)[...]
            y = jnp.dot(x, w_z, preferred_element_type=jnp.float32)
            if conditional:
                # onehot(c) @ W0_c == gather of the label rows of W0.
                w_c = refs.pop(0)[...]
                iota = lax.broadcasted_iota(
                    jnp.int32, (b_rows, num_labels_pad), 1)
                onehot = (iota == c_ref[...]).astype(jnp.float32)
                y = y + jnp.dot(onehot, w_c,
                                preferred_element_type=jnp.float32)
            y = y + refs.pop(0)[...]        # bias (1, H_pad)
        else:
            w = refs.pop(0)[...]
            b = refs.pop(0)[...]
            y = jnp.dot(x, w, preferred_element_type=jnp.float32) + b

        if li + 1 < n_layers:
            x = jnp.maximum(y, 0.0)                       # ReLU on VPU
        else:
            # Sigmoid: exp + approx reciprocal, both on the EUP slot.
            x = pl.reciprocal(1.0 + jnp.exp(-y), approx=True)

    o_ref[...] = x.astype(o_ref.dtype)


# --------------------------- Params & preparation ----------------------------

def init_decoder_params(key, layer_sizes, latent_size, conditional, num_labels):
    """nn.Linear-shaped params: W stored as (in_features, out_features)."""
    input_size = latent_size + num_labels if conditional else latent_size
    in_sizes = [input_size] + list(layer_sizes[:-1])
    params = []
    for in_size, out_size in zip(in_sizes, layer_sizes):
        key, kw, kb = jax.random.split(key, 3)
        bound = float(in_size) ** -0.5
        w = jax.random.uniform(kw, (in_size, out_size), jnp.float32,
                               -bound, bound)
        b = jax.random.uniform(kb, (out_size,), jnp.float32, -bound, bound)
        params.append((w, b))
    return params


def prepare_decoder_operands(params, latent_size, conditional, num_labels):
    """One-time padding/splitting of weights into lane-dense kernel operands.

    Returns [w0_z, (w0_c), b0, w1, b1, ...] with:
      * first-layer weight split into latent rows / label rows (conditional),
      * input dims padded to sublane (layer 0) or lane (layers >0) multiples,
      * output dims + biases padded to lane (128) multiples.
    Zero padding keeps the math exact.
    """
    ops = []
    for i, (w, b) in enumerate(params):
        in_size, out_size = w.shape
        out_pad = _round_up(out_size, LANE)
        if i == 0:
            if conditional:
                lat_pad = _round_up(latent_size, SUBLANE)
                lab_pad = _round_up(num_labels, SUBLANE)
                w_z = jnp.pad(w[:latent_size],
                              ((0, lat_pad - latent_size),
                               (0, out_pad - out_size)))
                w_c = jnp.pad(w[latent_size:],
                              ((0, lab_pad - num_labels),
                               (0, out_pad - out_size)))
                ops += [w_z, w_c]
            else:
                in_pad = _round_up(in_size, SUBLANE)
                ops += [jnp.pad(w, ((0, in_pad - in_size),
                                    (0, out_pad - out_size)))]
        else:
            in_pad = _round_up(in_size, LANE)   # prev activation padded to LANE
            ops += [jnp.pad(w, ((0, in_pad - in_size),
                                (0, out_pad - out_size)))]
        ops += [jnp.pad(b, (0, out_pad - out_size)).reshape(1, out_pad)]
    return ops


# ------------------------------ Forward pass ---------------------------------

@functools.partial(
    jax.jit,
    static_argnames=("layer_sizes", "latent_size", "conditional", "num_labels"))
def decoder_forward(padded_params, z, c, *, layer_sizes, latent_size,
                    conditional, num_labels):
    batch = z.shape[0]
    b_pad = _round_up(max(batch, SUBLANE), SUBLANE)
    lat_pad = _round_up(latent_size, SUBLANE)
    out_size = layer_sizes[-1]
    out_pad = _round_up(out_size, LANE)
    num_labels_pad = _round_up(num_labels, SUBLANE)
    n_layers = len(layer_sizes)

    z_p = jnp.pad(z.astype(jnp.float32),
                  ((0, b_pad - batch), (0, lat_pad - latent_size)))
    inputs = [z_p]
    if conditional:
        c2 = c if c.ndim == 2 else c[:, None]
        inputs.append(jnp.pad(c2.astype(jnp.int32), ((0, b_pad - batch), (0, 0))))
    inputs += list(padded_params)

    kernel = functools.partial(
        _decoder_mlp_kernel,
        conditional=conditional,
        num_labels_pad=num_labels_pad,
        n_layers=n_layers)

    out_padded = pl.pallas_call(
        kernel,
        out_shape=jax.ShapeDtypeStruct((b_pad, out_pad), jnp.float32),
        in_specs=[pl.BlockSpec(memory_space=pltpu.MemorySpace.VMEM)] * len(inputs),
        out_specs=pl.BlockSpec(memory_space=pltpu.MemorySpace.VMEM),
    )(*inputs)

    return out_padded[:batch, :out_size]


# ------------------------------- Reference -----------------------------------

def reference_forward(params, z, c, conditional, num_labels):
    """Pure-JAX reference matching the PyTorch Decoder.forward."""
    x = z.astype(jnp.float32)
    if conditional:
        onehot = jax.nn.one_hot(c.reshape(-1), num_labels, dtype=jnp.float32)
        x = jnp.concatenate([x, onehot], axis=-1)
    n = len(params)
    for i, (w, b) in enumerate(params):
        x = x @ w + b
        x = jnp.maximum(x, 0.0) if i + 1 < n else jax.nn.sigmoid(x)
    return x


# --------------------------------- main ---------------------------------------

if __name__ == "__main__":
    layer_sizes = (32, 64)   # MLP hidden -> output sizes
    latent_size = 8
    conditional = True
    num_labels = 10          # PyTorch forward hardcodes n=10
    batch = 4

    key = jax.random.PRNGKey(0)
    key, kz, kc, kp = jax.random.split(key, 4)

    z = jax.random.normal(kz, (batch, latent_size), dtype=jnp.float32)
    c = jax.random.randint(kc, (batch,), 0, num_labels, dtype=jnp.int32)

    params = init_decoder_params(kp, layer_sizes, latent_size, conditional,
                                 num_labels)
    padded_params = prepare_decoder_operands(params, latent_size, conditional,
                                             num_labels)

    out = decoder_forward(padded_params, z, c,
                          layer_sizes=layer_sizes, latent_size=latent_size,
                          conditional=conditional, num_labels=num_labels)
    out = jax.block_until_ready(out)

    ref = reference_forward(params, z, c, conditional, num_labels)
    assert out.shape == (batch, layer_sizes[-1]), out.shape
    max_err = float(jnp.max(jnp.abs(out - ref)))
    # approx reciprocal in the sigmoid epilogue has ~2^-12 relative error
    assert max_err < 2e-3, f"max abs err vs reference: {max_err}"
    print("KERNEL_OK")
</pallas_src>

<mosaic_0001>
module attributes {stable_mosaic.version = 11 : i64} {
  func.func @_decoder_mlp_kernel(%arg0: memref<8x8xf32, #tpu.memory_space<vmem>>, %arg1: memref<8x1xi32, #tpu.memory_space<vmem>>, %arg2: memref<8x128xf32, #tpu.memory_space<vmem>>, %arg3: memref<16x128xf32, #tpu.memory_space<vmem>>, %arg4: memref<1x128xf32, #tpu.memory_space<vmem>>, %arg5: memref<128x128xf32, #tpu.memory_space<vmem>>, %arg6: memref<1x128xf32, #tpu.memory_space<vmem>>, %arg7: memref<8x128xf32, #tpu.memory_space<vmem>>) attributes {dimension_semantics = [], scalar_prefetch = 0 : i64, scratch_operands = 0 : i64, tpu.core_type = #tpu.core_type<tc>} {
    %c0 = arith.constant 0 : index
    %c0_0 = arith.constant 0 : index
    %0 = vector.load %arg0[%c0, %c0_0] : memref<8x8xf32, #tpu.memory_space<vmem>>, vector<8x8xf32>
    %c0_1 = arith.constant 0 : index
    %c0_2 = arith.constant 0 : index
    %1 = vector.load %arg2[%c0_1, %c0_2] : memref<8x128xf32, #tpu.memory_space<vmem>>, vector<8x128xf32>
    %cst = arith.constant dense<0.000000e+00> : vector<8x128xf32>
    %2 = tpu.matmul %0, %1, %cst {dimension_numbers = #tpu.dot_dimension_numbers<[1], [0], [0], [1], [0, 0, 1, 1], [], []>} : vector<8x8xf32>, vector<8x128xf32>, vector<8x128xf32> -> vector<8x128xf32>
    %c0_3 = arith.constant 0 : index
    %c0_4 = arith.constant 0 : index
    %3 = vector.load %arg3[%c0_3, %c0_4] : memref<16x128xf32, #tpu.memory_space<vmem>>, vector<16x128xf32>
    %4 = tpu.iota {dimensions = array<i32: 1>} : vector<8x16xi32>
    %c0_5 = arith.constant 0 : index
    %c0_6 = arith.constant 0 : index
    %5 = vector.load %arg1[%c0_5, %c0_6] : memref<8x1xi32, #tpu.memory_space<vmem>>, vector<8x1xi32>
    %6 = vector.broadcast %5 : vector<8x1xi32> to vector<8x16xi32>
    %7 = arith.cmpi eq, %4, %6 : vector<8x16xi32>
    %8 = arith.extui %7 : vector<8x16xi1> to vector<8x16xi32>
    %9 = arith.sitofp %8 : vector<8x16xi32> to vector<8x16xf32>
    %cst_7 = arith.constant dense<0.000000e+00> : vector<8x128xf32>
    %10 = tpu.matmul %9, %3, %cst_7 {dimension_numbers = #tpu.dot_dimension_numbers<[1], [0], [0], [1], [0, 0, 1, 1], [], []>} : vector<8x16xf32>, vector<16x128xf32>, vector<8x128xf32> -> vector<8x128xf32>
    %11 = arith.addf %2, %10 : vector<8x128xf32>
    %c0_8 = arith.constant 0 : index
    %c0_9 = arith.constant 0 : index
    %12 = vector.load %arg4[%c0_8, %c0_9] : memref<1x128xf32, #tpu.memory_space<vmem>>, vector<1x128xf32>
    %13 = vector.broadcast %12 : vector<1x128xf32> to vector<8x128xf32>
    %14 = arith.addf %11, %13 : vector<8x128xf32>
    %cst_10 = arith.constant 0.000000e+00 : f32
    %15 = vector.broadcast %cst_10 : f32 to vector<8x128xf32>
    %16 = arith.maximumf %14, %15 : vector<8x128xf32>
    %c0_11 = arith.constant 0 : index
    %c0_12 = arith.constant 0 : index
    %17 = vector.load %arg5[%c0_11, %c0_12] : memref<128x128xf32, #tpu.memory_space<vmem>>, vector<128x128xf32>
    %c0_13 = arith.constant 0 : index
    %c0_14 = arith.constant 0 : index
    %18 = vector.load %arg6[%c0_13, %c0_14] : memref<1x128xf32, #tpu.memory_space<vmem>>, vector<1x128xf32>
    %cst_15 = arith.constant dense<0.000000e+00> : vector<8x128xf32>
    %19 = tpu.matmul %16, %17, %cst_15 {dimension_numbers = #tpu.dot_dimension_numbers<[1], [0], [0], [1], [0, 0, 1, 1], [], []>} : vector<8x128xf32>, vector<128x128xf32>, vector<8x128xf32> -> vector<8x128xf32>
    %20 = vector.broadcast %18 : vector<1x128xf32> to vector<8x128xf32>
    %21 = arith.addf %19, %20 : vector<8x128xf32>
    %cst_16 = arith.constant 0.000000e+00 : f32
    %22 = vector.broadcast %cst_16 : f32 to vector<8x128xf32>
    %23 = arith.subf %22, %21 : vector<8x128xf32>
    %24 = math.exp %23 : vector<8x128xf32>
    %cst_17 = arith.constant 1.000000e+00 : f32
    %25 = vector.broadcast %cst_17 : f32 to vector<8x128xf32>
    %26 = arith.addf %25, %24 : vector<8x128xf32>
    %27 = tpu.reciprocal %26 {approx = true} : vector<8x128xf32> -> vector<8x128xf32>
    %c0_18 = arith.constant 0 : index
    %c0_19 = arith.constant 0 : index
    %28 = vector.load %arg7[%c0_18, %c0_19] : memref<8x128xf32, #tpu.memory_space<vmem>>, vector<8x128xf32>
    tpu.vector_store %arg7[%c0_18, %c0_19], %27 {strides = array<i32>} : memref<8x128xf32, #tpu.memory_space<vmem>>, vector<8x128xf32>,
    return
  }
}

</mosaic_0001>

<bundles_post_ra>
// kernel: decoder_forward.1
= control target key start
LH: loop header
LB: loop body
LE: loop exit
PB: predicated region body
PF: predicated region fallthrough
CT: control target
= control target key end

     0   :  { %12 = vsyncpa [#allocation3], 0  ;;  %s451_s24 = smov [#allocation2]   ;;  %s537_s0 = inlined_call_operand.vmem [shape: f32[8,8], index: 0, kind: input, shape index: {}]   ;;  %s538_s1 = inlined_call_operand.vmem [shape: s32[8,1], index: 1, kind: input, shape index: {}]   ;;  %s539_s2 = inlined_call_operand.vmem [shape: f32[8,128], index: 2, kind: input, shape index: {}]   ;;  %s540_s3 = inlined_call_operand.vmem [shape: f32[16,128], index: 3, kind: input, shape index: {}]   ;;  %s541_s4 = inlined_call_operand.vmem [shape: f32[1,128], index: 4, kind: input, shape index: {}]   ;;  %s542_s5 = inlined_call_operand.hbm [shape: f32[128,128], index: 5, kind: input, shape index: {}]   ;;  %s543_s6 = inlined_call_operand.vmem [shape: f32[1,128], index: 6, kind: input, shape index: {}]   ;;  %s544_s7 = inlined_call_operand.vmem [shape: f32[8,128], index: 7, kind: output, shape index: {}]  }
   0x1   :  { %s28_s25 = sshll.u32 %s451_s24, 4  ;;  %s427_s28 = scalar_lea.hbm %s542_s5, 2048  ;;  %s29_s25 = int_to_ptr.vmem [resolvable:$true] %s28_s25 }
   0x2   :  { %p428_p0 = scmp.ne.s32.totalorder %s542_s5, %s427_s28  ;;  %p431_p1 = scmp.lt.u32.totalorder %s427_s28, %s542_s5 }
   0x4   :  { %p433_p2 = pnand %p431_p1, %p428_p0 }
   0x6   :  { %436 = shalt.err (!%p433_p2)
}
   0x7   :  { %s437_s10 = scalar_lea.vmem %s29_s25, 2048  ;;  %p442_p4 = scmp.lt.s32.totalorder %s29_s25, %s29_s25 }
   0x8   :  { %p438_p3 = scmp.ne.s32.totalorder %s29_s25, %s437_s10  ;;  %p443_p5 = scmp.lt.s32.totalorder %s437_s10, %s437_s10 }
   0xa   :  { %p444_p6 = por %p443_p5, %p442_p4 }
   0xc   :  { %p445_p7 = pnand %p444_p6, %p438_p3 }
   0xe   :  { %448 = shalt.err (!%p445_p7)
}
   0xf   :  { %s452_s11 = smov 128   ;;  %s453_s12 = smov 8  }
  0x10   :  { %34 = dma.hbm_to_vmem [thread:$0]  %s542_s5, 2048, %s29_s25, [#allocation3], %s452_s11, %s452_s11, %s453_s12  }
  0x11   :  { %449 = dma.done.wait [#allocation3], 2048  }
  0x12   :  { %450 = vsyncadd [#allocation3], 4294965248  ;;  %v454_v0 = vmov 0   ;;  %v455_v1 = vmov 0.0|0.0   ;;  %v46_v2 = vld [vmem:[%s538_s1] sm:$0xff]  ;;  %v43_v4 = vld [vmem:[%s540_s3 + $0x8] sm:$0xff]  ;;  %v44_v22 = vlaneseq }
  0x13   :  { %422 = vset.pattern.permute.xlu0 %v454_v0  ;;  %388 = vmatprep.subr.bf16.mxu0 %v455_v1  ;;  %v42_v3 = vld [vmem:[%s540_s3] sm:$0xff]  ;;  %vm456_vm0 = vmmov 0   ;;  %v457_v6 = vmov 0.0   ;;  %v211_v8 = vld [vmem:[#allocation2 + $0x8] sm:$0xff]  ;;  %v212_v9 = vld [vmem:[#allocation2 + $0x10] sm:$0xff]  ;;  %vm53_vm1 = vcmask 130048  }
  0x14   :  { %391 = vmatprep.subr.bf16.mxu1 %v455_v1  ;;  %48 = vperm.xlu0 %422, %v46_v2   ;;  %v389_v5 = vpack.c.bf16 %v43_v4, %v42_v3  ;;  %v210_v7 = vld [vmem:[#allocation2] sm:$0xff]  ;;  %v213_v11 = vld [vmem:[#allocation2 + $0x18] sm:$0xff]  ;;  %v215_v14 = vld [vmem:[#allocation2 + $0x28] sm:$0xff]  ;;  %v45_v23 = vand.u32 127, %v44_v22  ;;  %vm127_vm3 = vcmask 64512  }
  0x15   :  { %345 = vmatprep.mubr.msk.f32.mxu0 %vm456_vm0, %v457_v6  ;;  %385 = vmatprep.mubr.msk.f32.mxu1 %vm456_vm0, %v457_v6  ;;  %v392_v10 = vpack.c.bf16 %v211_v8, %v210_v7  ;;  %v395_v12 = vpack.c.bf16 %v213_v11, %v212_v9  ;;  %v214_v13 = vld [vmem:[#allocation2 + $0x20] sm:$0xff]  ;;  %v216_v16 = vld [vmem:[#allocation2 + $0x30] sm:$0xff]  ;;  %v217_v17 = vld [vmem:[#allocation2 + $0x38] sm:$0xff] }
  0x16   :  { %390 = vmatpush3.bf16.msra.mxu0 %v389_v5  ;;  %v398_v15 = vpack.c.bf16 %v215_v14, %v214_v13  ;;  %v401_v18 = vpack.c.bf16 %v217_v17, %v216_v16  ;;  %v218_v19 = vld [vmem:[#allocation2 + $0x40] sm:$0xff]  ;;  %v219_v20 = vld [vmem:[#allocation2 + $0x48] sm:$0xff]  ;;  %v220_v28 = vld [vmem:[#allocation2 + $0x50] sm:$0xff] }
  0x17   :  { %348 = vmatprep.subr.mxu0 %v457_v6  ;;  %393 = vmatpush3.bf16.msra.mxu1 %v392_v10  ;;  %v404_v21 = vpack.c.bf16 %v219_v20, %v218_v19  ;;  %v41_v25 = vld [vmem:[%s539_s2] sm:$0xff]  ;;  %v221_v29 = vld [vmem:[#allocation2 + $0x58] sm:$0xff]  ;;  %v223_v32 = vld [vmem:[#allocation2 + $0x68] sm:$0xff] }
  0x18   :  { %394 = vmatprep.subr.bf16.mxu1 %v455_v1  ;;  %v40_v27 = vld [vmem:[%s537_s0] sm:$0xff]  ;;  %v407_v30 = vpack.c.bf16 %v221_v29, %v220_v28  ;;  %v224_v34 = vld [vmem:[#allocation2 + $0x70] sm:$0xff]  ;;  %v225_v35 = vld [vmem:[#allocation2 + $0x78] sm:$0xff] }
  0x19   :  { %v222_v31 = vld [vmem:[#allocation2 + $0x60] sm:$0xff]  ;;  %v413_v36 = vpack.c.bf16 %v225_v35, %v224_v34 }
  0x1a   :  { %v410_v33 = vpack.c.bf16 %v223_v32, %v222_v31  ;;  %v317_v40 = vld [vmem:[%s541_s4] ss:$0 sm:$0xff] }
  0x1b   :  { %396 = vmatpush3.bf16.msra.mxu1 %v395_v12  ;;  %v318_v45 = vld [vmem:[%s543_s6] ss:$0 sm:$0xff] }
  0x1c   :  { %397 = vmatprep.subr.bf16.mxu1 %v455_v1 }
  0x1f   :  { %399 = vmatpush3.bf16.msra.mxu1 %v398_v15 }
  0x20   :  { %400 = vmatprep.subr.bf16.mxu1 %v455_v1 }
  0x23   :  { %402 = vmatpush3.bf16.msra.mxu1 %v401_v18 }
  0x24   :  { %403 = vmatprep.subr.bf16.mxu1 %v455_v1 }
  0x27   :  { %405 = vmatpush3.bf16.msra.mxu1 %v404_v21 }
  0x28   :  { %406 = vmatprep.subr.bf16.mxu1 %v455_v1 }
  0x2b   :  { %408 = vmatpush3.bf16.msra.mxu1 %v407_v30 }
  0x2c   :  { %409 = vmatprep.subr.bf16.mxu1 %v455_v1 }
  0x2f   :  { %411 = vmatpush3.bf16.msra.mxu1 %v410_v33 }
  0x30   :  { %412 = vmatprep.subr.bf16.mxu1 %v455_v1 }
  0x33   :  { %414 = vmatpush3.bf16.msra.mxu1 %v413_v36 }
  0x93   :  { %v49_v24 = vpop.permute.xlu0 %48 }
  0x94   :  { %vm50_vm2 = vcmp.eq.s32.totalorder %v45_v23, %v49_v24 }
  0x95   :  { %v314_v26 = vsel %vm50_vm2, 1.0, %v457_v6 }
  0x96   :  { %346 = vmatmul.mubr.msk.f32.vlgmr.msra.gmra.mrb[0].mxu0 %vm53_vm1, %v314_v26 }
  0x97   :  { %349 = vmatpush3.msra.mxu0 %v41_v25  ;;  %350 = vmatprep.mubr.msk.f32.mxu0 %vm456_vm0, %v457_v6 }
  0x9a   :  { %351 = vmatmul.mubr.msk.f32.vlgmr.msra.gmra.mrb[2].mxu0 %vm127_vm3, %v40_v27 }
 0x169   :  { %v123_v37 = vpop.f32.mrb[0].mxu0 }
 0x16a   :  { %v347_v38 = vpop.f32.mrb[1].mxu0 }
 0x16d   :  { %v197_v39 = vpop.f32.mrb[2].mxu0 }
 0x16e   :  { %v198_v41 = vadd.f32 %v197_v39, %v123_v37  ;;  %v352_v42 = vpop.f32.mrb[3].mxu0 }
 0x170   :  { %v208_v43 = vadd.f32 %v317_v40, %v198_v41 }
 0x172   :  { %v209_v44 = vmax.f32 %v208_v43, 0.0 }
 0x174   :  { %386 = vmatmul.mubr.f32.vlgmr.msra.gmra.mrb[0].mxu1 %v209_v44 }
 0x247   :  { %v299_v46 = vpop.f32.mrb[0].mxu1 }
 0x248   :  { %v300_v47 = vadd.f32 %v318_v45, %v299_v46  ;;  %v387_v48 = vpop.f32.mrb[1].mxu1 }
 0x24a   :  { %v303_v49 = vsub.f32 0.0, %v300_v47 }
 0x24c   :  { %v304_v50 = vmul.f32 1.442695, %v303_v49 }
 0x24e   :  { %423 = vpow2.f32 %v304_v50 }
 0x258   :  { %v424_v51 = vpop.eup %423 }
 0x259   :  { %v306_v52 = vadd.f32 1.0, %v424_v51 }
 0x25b   :  { %425 = vrcp.f32 %v306_v52 }
 0x265   :  { %v426_v53 = vpop.eup %425 }
 0x266   :  { %308 = vst [vmem:[%s544_s7] sm:$0xff] %v426_v53 }
 0x267   :  { %313 = vsyncpa [#allocation3], 1 }

</bundles_post_ra>
